<compile_context>
chip_gen: v5e
topology: v5e:2x2
jax: 0.10.0
libtpu: 0.0.40
codegen_flags: <defaults>
</compile_context>

<pallas_src>
import jax
import jax.numpy as jnp
from jax.experimental import pallas as pl
from jax.experimental.pallas import tpu as pltpu

P_DROP = 0.5

_VMEM_BUDGET = 20 << 20        # per-step double-buffered budget; safe on v7x (64 MiB phys)
_TARGET_STEP_BYTES = 2 << 20   # useful HBM bytes/step >= step-overhead breakeven (v5e..v7x)


# --------------------- fused body (1x1 conv + ReLU) + Dropout2d ---------------------
def _fused_body_dropout_kernel(x_ref, w_ref, b_ref, scale_ref, xout_ref, res_ref):
    """One (batch-block, spatial-tile) grid step.

    x_ref     : (nb, Cin, hw_tile)   input activations, spatial on lanes
    w_ref     : (Cout, Cin)          1x1 conv weight
    b_ref     : (Cout, 1)            bias
    scale_ref : (nb, Cout, 1)        f32 dropout scale = keep * 1/(1-p)
    xout_ref  : (nb, Cout, hw_tile)  relu(conv(x))               (main path)
    res_ref   : (nb, Cout, hw_tile)  conv(x) * dropout scale     (residual path)
    """
    # (Cout,Cin) x (nb,Cin,hw_tile) -> (nb,Cout,hw_tile); spatial stays lane-dense.
    # Tiny channel counts underuse the MXU, but the kernel is HBM-bound either way.
    y = jnp.einsum("oi,bil->bol", w_ref[...], x_ref[...],
                   preferred_element_type=jnp.float32)
    y = y + b_ref[...][None].astype(jnp.float32)              # (1, Cout, 1) broadcast
    xout_ref[...] = jnp.maximum(y, 0.0).astype(xout_ref.dtype)
    # Fused Dropout2d: one multiply per element; scale stays f32, cast only at store.
    res_ref[...] = (y * scale_ref[...]).astype(res_ref.dtype)


# ------------------------------- tiling planner -------------------------------
def _sublane(dtype):
    return 16 if jnp.dtype(dtype) == jnp.dtype(jnp.bfloat16) else 8


def _pad_up(v, m):
    return -(-v // m) * m


def _plan_tiling(n, cin, cout, hw, in_dtype, out_dtype):
    """Pick (nb, hw_tile, hw_pad, vmem_limit_bytes) from a VMEM/bandwidth budget."""
    in_b = jnp.dtype(in_dtype).itemsize
    out_b = jnp.dtype(out_dtype).itemsize
    cin_p = _pad_up(cin, _sublane(in_dtype))     # account for sublane padding
    cout_p = _pad_up(cout, _sublane(out_dtype))

    # Double-buffered VMEM bytes per lane column per batch item (1 in + 2 out blocks).
    vmem_per_lane = 2 * (cin_p * in_b + 2 * cout_p * out_b)
    # Useful HBM bytes per lane column per batch item.
    hbm_per_lane = cin * in_b + 2 * cout * out_b

    hw_pad = _pad_up(hw, 128)
    max_tile = max(128, (_VMEM_BUDGET // vmem_per_lane) // 128 * 128)
    hw_tile = min(hw_pad, max_tile)
    hw_tile -= hw_tile % 128
    while hw_pad % hw_tile != 0:
        hw_tile -= 128
    tiles_per_image = hw_pad // hw_tile

    # Pack batch items per step to amortize the ~0.35us per-grid-step overhead when
    # spatial extent is small; keep >=2 total steps so v7x megacore has work to split.
    def total_steps(nb_):
        return (n // nb_) * tiles_per_image

    nb = 1
    while (nb < n and n % (2 * nb) == 0
           and nb * hw_tile * hbm_per_lane < _TARGET_STEP_BYTES
           and 2 * nb * hw_tile * vmem_per_lane <= _VMEM_BUDGET
           and total_steps(2 * nb) >= 2):
        nb *= 2

    footprint = nb * hw_tile * vmem_per_lane + (1 << 20)   # + weights/bias/scale slack
    vmem_limit = int(min(max(footprint + (8 << 20), 32 << 20), 64 << 20))
    return nb, hw_tile, hw_pad, vmem_limit


def dropout2d_plane_scale(key, n, c, p, training):
    """Per-(batch, channel) f32 scale implementing nn.Dropout2d semantics."""
    if (not training) or p <= 0.0:
        return jnp.ones((n, c, 1), jnp.float32)
    if p >= 1.0:                                  # guard: avoid inf from 1/(1-p)
        return jnp.zeros((n, c, 1), jnp.float32)
    keep = jax.random.bernoulli(key, 1.0 - p, (n, c, 1)).astype(jnp.float32)
    return keep * (1.0 / (1.0 - p))


# ----------------------------- DropoutWrapper forward -----------------------------
def dropout_wrapper_forward(x_nchw, w, b, *, dropout_key, p=P_DROP, training=True,
                            out_dtype=None):
    """x, res = body(x); res_out = Dropout2d(p)(res); return (x, res_out)."""
    N, Cin, H, W = x_nchw.shape
    Cout = w.shape[0]
    HW = H * W
    out_dtype = jnp.dtype(x_nchw.dtype) if out_dtype is None else jnp.dtype(out_dtype)

    x3d = x_nchw.reshape(N, Cin, HW)                         # free reshape, no transpose
    scale = dropout2d_plane_scale(dropout_key, N, Cout, p, training)   # f32

    nb, hw_tile, hw_pad, vmem_limit = _plan_tiling(N, Cin, Cout, HW,
                                                   x_nchw.dtype, out_dtype)
    if hw_pad != HW:
        # Lane-dense padding: keeps stores full-width vst instead of masked vst.msk.
        x3d = jnp.pad(x3d, ((0, 0), (0, 0), (0, hw_pad - HW)))

    grid = (N // nb, hw_pad // hw_tile)
    in_b = jnp.dtype(x_nchw.dtype).itemsize
    out_b = out_dtype.itemsize
    cost = pl.CostEstimate(
        flops=2 * N * Cout * Cin * hw_pad,
        transcendentals=0,
        bytes_accessed=N * hw_pad * (Cin * in_b + 2 * Cout * out_b),
    )

    xout3d, res3d = pl.pallas_call(
        _fused_body_dropout_kernel,
        out_shape=(jax.ShapeDtypeStruct((N, Cout, hw_pad), out_dtype),
                   jax.ShapeDtypeStruct((N, Cout, hw_pad), out_dtype)),
        grid=grid,
        in_specs=[
            pl.BlockSpec((nb, Cin, hw_tile), lambda n, t: (n, 0, t)),
            pl.BlockSpec((Cout, Cin), lambda n, t: (0, 0)),
            pl.BlockSpec((Cout, 1), lambda n, t: (0, 0)),
            pl.BlockSpec((nb, Cout, 1), lambda n, t: (n, 0, 0)),
        ],
        out_specs=(
            pl.BlockSpec((nb, Cout, hw_tile), lambda n, t: (n, 0, t)),
            pl.BlockSpec((nb, Cout, hw_tile), lambda n, t: (n, 0, t)),
        ),
        compiler_params=pltpu.CompilerParams(
            dimension_semantics=("parallel", "parallel"),   # both axes independent
            vmem_limit_bytes=vmem_limit,
        ),
        cost_estimate=cost,
    )(x3d, w, b, scale)

    if hw_pad != HW:
        xout3d = xout3d[:, :, :HW]
        res3d = res3d[:, :, :HW]
    return xout3d.reshape(N, Cout, H, W), res3d.reshape(N, Cout, H, W)


if __name__ == "__main__":
    key = jax.random.PRNGKey(0)
    kx, kw, kb, kd = jax.random.split(key, 4)

    N, C, H, W = 2, 4, 16, 16
    x = jax.random.normal(kx, (N, C, H, W), dtype=jnp.float32)
    # deterministic synthetic params for the body (1x1 conv: Cin = Cout = C)
    w = 0.1 * jax.random.normal(kw, (C, C), dtype=jnp.float32)   # (Cout, Cin)
    b = 0.1 * jax.random.normal(kb, (C, 1), dtype=jnp.float32)

    # f32 path (exact reference check)
    x_out, res_out = dropout_wrapper_forward(x, w, b, dropout_key=kd,
                                             p=P_DROP, training=True)
    jax.block_until_ready((x_out, res_out))
    assert x_out.shape == (N, C, H, W) and res_out.shape == (N, C, H, W)

    y_ref = jnp.einsum("oi,nihw->nohw", w, x) + b.reshape(1, C, 1, 1)
    scale_ref = dropout2d_plane_scale(kd, N, C, P_DROP, True)
    res_ref = y_ref * scale_ref.reshape(N, C, 1, 1)
    assert jnp.allclose(x_out, jnp.maximum(y_ref, 0.0), atol=1e-5, rtol=1e-5)
    assert jnp.allclose(res_out, res_ref, atol=1e-5, rtol=1e-5)

    # bf16-output path (f32 accumulate + epilogue, bf16 stores): ~33% less HBM traffic.
    x_out16, res_out16 = dropout_wrapper_forward(x, w, b, dropout_key=kd,
                                                 p=P_DROP, training=True,
                                                 out_dtype=jnp.bfloat16)
    jax.block_until_ready((x_out16, res_out16))
    assert x_out16.dtype == jnp.bfloat16 and res_out16.dtype == jnp.bfloat16
    assert jnp.max(jnp.abs(x_out16.astype(jnp.float32)
                           - jnp.maximum(y_ref, 0.0))) < 5e-2
    assert jnp.max(jnp.abs(res_out16.astype(jnp.float32) - res_ref)) < 5e-2

    print("KERNEL_OK")
</pallas_src>

<mosaic_0001>
module attributes {stable_mosaic.version = 11 : i64} {
  func.func @_fused_body_dropout_kernel(%arg0: i32, %arg1: i32, %arg2: memref<1x4x256xf32, #tpu.memory_space<vmem>>, %arg3: memref<4x4xf32, #tpu.memory_space<vmem>>, %arg4: memref<4x1xf32, #tpu.memory_space<vmem>>, %arg5: memref<1x4x1xf32, #tpu.memory_space<vmem>>, %arg6: memref<1x4x256xf32, #tpu.memory_space<vmem>>, %arg7: memref<1x4x256xf32, #tpu.memory_space<vmem>>) attributes {dimension_semantics = [#tpu.dimension_semantics<parallel>, #tpu.dimension_semantics<parallel>], iteration_bounds = array<i64: 2, 1>, scalar_prefetch = 0 : i64, scratch_operands = 0 : i64, tpu.core_type = #tpu.core_type<tc>, window_params = [{transform_indices = @transform_0, window_bounds = array<i64: 1, 4, 256>}, {pipeline_mode = #tpu.pipeline_mode<synchronous>, transform_indices = @transform_1, window_bounds = array<i64: 4, 4>}, {pipeline_mode = #tpu.pipeline_mode<synchronous>, transform_indices = @transform_2, window_bounds = array<i64: 4, 1>}, {transform_indices = @transform_3, window_bounds = array<i64: 1, 4, 1>}, {transform_indices = @transform_4, window_bounds = array<i64: 1, 4, 256>}, {transform_indices = @transform_5, window_bounds = array<i64: 1, 4, 256>}]} {
    %c0 = arith.constant 0 : index
    %c0_0 = arith.constant 0 : index
    %0 = vector.load %arg3[%c0, %c0_0] : memref<4x4xf32, #tpu.memory_space<vmem>>, vector<4x4xf32>
    %c0_1 = arith.constant 0 : index
    %c0_2 = arith.constant 0 : index
    %c0_3 = arith.constant 0 : index
    %1 = vector.load %arg2[%c0_1, %c0_2, %c0_3] : memref<1x4x256xf32, #tpu.memory_space<vmem>>, vector<1x4x256xf32>
    "tpu.trace_start"() <{level = 10 : i32, message = "oi,bil->bol"}> : () -> ()
    %cst = arith.constant dense<0.000000e+00> : vector<1x256x4xf32>
    %2 = tpu.matmul %1, %0, %cst {dimension_numbers = #tpu.dot_dimension_numbers<[1], [1], [0, 2], [0], [0, 0, 0, 2, 1, 0], [], []>} : vector<1x4x256xf32>, vector<4x4xf32>, vector<1x256x4xf32> -> vector<1x256x4xf32>
    %3 = tpu.transpose %2, [0, 2, 1] : vector<1x256x4xf32> -> vector<1x4x256xf32>
    "tpu.trace_stop"() : () -> ()
    %c0_4 = arith.constant 0 : index
    %c0_5 = arith.constant 0 : index
    %4 = vector.load %arg4[%c0_4, %c0_5] : memref<4x1xf32, #tpu.memory_space<vmem>>, vector<4x1xf32>
    %5 = vector.shape_cast %4 : vector<4x1xf32> to vector<1x4x1xf32>
    %6 = vector.broadcast %5 : vector<1x4x1xf32> to vector<1x4x256xf32>
    %7 = arith.addf %3, %6 : vector<1x4x256xf32>
    %cst_6 = arith.constant 0.000000e+00 : f32
    %8 = vector.broadcast %cst_6 : f32 to vector<1x4x256xf32>
    %9 = arith.maximumf %7, %8 : vector<1x4x256xf32>
    %c0_7 = arith.constant 0 : index
    %c0_8 = arith.constant 0 : index
    %c0_9 = arith.constant 0 : index
    %10 = vector.load %arg6[%c0_7, %c0_8, %c0_9] : memref<1x4x256xf32, #tpu.memory_space<vmem>>, vector<1x4x256xf32>
    tpu.vector_store %arg6[%c0_7, %c0_8, %c0_9], %9 {strides = array<i32>} : memref<1x4x256xf32, #tpu.memory_space<vmem>>, vector<1x4x256xf32>,
    %c0_10 = arith.constant 0 : index
    %c0_11 = arith.constant 0 : index
    %c0_12 = arith.constant 0 : index
    %11 = vector.load %arg5[%c0_10, %c0_11, %c0_12] : memref<1x4x1xf32, #tpu.memory_space<vmem>>, vector<1x4x1xf32>
    %12 = vector.broadcast %11 : vector<1x4x1xf32> to vector<1x4x256xf32>
    %13 = arith.mulf %7, %12 : vector<1x4x256xf32>
    %c0_13 = arith.constant 0 : index
    %c0_14 = arith.constant 0 : index
    %c0_15 = arith.constant 0 : index
    %14 = vector.load %arg7[%c0_13, %c0_14, %c0_15] : memref<1x4x256xf32, #tpu.memory_space<vmem>>, vector<1x4x256xf32>
    tpu.vector_store %arg7[%c0_13, %c0_14, %c0_15], %13 {strides = array<i32>} : memref<1x4x256xf32, #tpu.memory_space<vmem>>, vector<1x4x256xf32>,
    return
  }
  func.func @transform_0(%arg0: i32, %arg1: i32) -> (i32, i32, i32) {
    %c0_i32 = arith.constant 0 : i32
    %c0_i32_0 = arith.constant 0 : i32
    return %arg0, %c0_i32, %arg1 : i32, i32, i32
  }
  func.func @transform_1(%arg0: i32, %arg1: i32) -> (i32, i32) {
    %c0_i32 = arith.constant 0 : i32
    %c0_i32_0 = arith.constant 0 : i32
    %c0_i32_1 = arith.constant 0 : i32
    return %c0_i32, %c0_i32_0 : i32, i32
  }
  func.func @transform_2(%arg0: i32, %arg1: i32) -> (i32, i32) {
    %c0_i32 = arith.constant 0 : i32
    %c0_i32_0 = arith.constant 0 : i32
    %c0_i32_1 = arith.constant 0 : i32
    return %c0_i32, %c0_i32_0 : i32, i32
  }
  func.func @transform_3(%arg0: i32, %arg1: i32) -> (i32, i32, i32) {
    %c0_i32 = arith.constant 0 : i32
    %c0_i32_0 = arith.constant 0 : i32
    %c0_i32_1 = arith.constant 0 : i32
    return %arg0, %c0_i32, %c0_i32_0 : i32, i32, i32
  }
  func.func @transform_4(%arg0: i32, %arg1: i32) -> (i32, i32, i32) {
    %c0_i32 = arith.constant 0 : i32
    %c0_i32_0 = arith.constant 0 : i32
    return %arg0, %c0_i32, %arg1 : i32, i32, i32
  }
  func.func @transform_5(%arg0: i32, %arg1: i32) -> (i32, i32, i32) {
    %c0_i32 = arith.constant 0 : i32
    %c0_i32_0 = arith.constant 0 : i32
    return %arg0, %c0_i32, %arg1 : i32, i32, i32
  }
}

</mosaic_0001>

<bundles_post_ra>
// kernel: tpu_custom_call.1
= control target key start
LH: loop header
LB: loop body
LE: loop exit
PB: predicated region body
PF: predicated region fallthrough
CT: control target
= control target key end

     0   :  { %11 = vsyncpa [#allocation3], 0  ;;  %s1357_s0 = inlined_call_operand.hbm [shape: f32[2,4,256], index: 0, kind: input, shape index: {}]   ;;  %s1358_s1 = inlined_call_operand.vmem [shape: f32[4,4], index: 1, kind: input, shape index: {}]   ;;  %s1359_s2 = inlined_call_operand.vmem [shape: f32[4,1], index: 2, kind: input, shape index: {}]   ;;  %s1360_s3 = inlined_call_operand.vmem [shape: f32[2,4,1], index: 3, kind: input, shape index: {}]   ;;  %s1361_s4 = inlined_call_operand.hbm [shape: f32[2,4,256], index: 4, kind: output, shape index: {0}]   ;;  %s1362_s5 = inlined_call_operand.hbm [shape: f32[2,4,256], index: 5, kind: output, shape index: {1}]  }
   0x1   :  { %13 = vsyncpa [#allocation3 + $0x1], 0 }
   0x2   :  { %14 = vsyncpa [#allocation4], 0 }
   0x3   :  { %16 = vsyncpa [#allocation4 + $0x1], 0 }
   0x4   :  { %17 = vsyncpa [#allocation7], 0 }
   0x5   :  { %19 = vsyncpa [#allocation7 + $0x1], 0  ;;  %s1155_s18 = smov 0   ;;  %s1157_s19 = smov 0  }
   0x6   :  { %s1159_s20 = smov 0   ;;  %s1161_s21 = smov 0  }
   0x7   :  { %s1163_s22 = smov 0   ;;  %s1165_s23 = smov 0  }
   0x8 LB: > { %s847_s24 = sadd.s32 4294967295, %s1122_s23   ;;  %s848_s25 = sadd.s32 4294967294, %s1122_s23   ;;  %s1122_s23 = sphi %s1165_s23, %s25_s23   ;;  %s1118_s22 = sphi %s1163_s22, %s1371_s22   ;;  %s1114_s21 = sphi %s1161_s21, %s1370_s21   ;;  %s1110_s20 = sphi %s1159_s20, %s1369_s20   ;;  %s1106_s19 = sphi %s1157_s19, %s1368_s19   ;;  %s1102_s18 = sphi %s1155_s18, %s1367_s18  }
   0x9   : > { %s37_s26 = sadd.s32 1, %s1118_s22  ;;  %s46_s27 = sadd.s32 1, %s1110_s20 }
   0xa   : > { %p39_p0 = scmp.ge.s32.totalorder %s37_s26, 2  ;;  %p53_p1 = scmp.ne.s32.totalorder %s1110_s20, %s1106_s19 }
   0xb   : > { %p54_p2 = scmp.eq.s32.totalorder %s1122_s23, 0  ;;  %p59_p3 = scmp.ne.s32.totalorder %s1106_s19, %s1102_s18 }
   0xc   : > { %s1373_s26 = smov (%p39_p0, %s37_s26), 0  ;;  %p60_p5 = scmp.eq.s32.totalorder %s847_s24, 0 }
   0xd   : > { %p1196_p4 = por %p54_p2, %p53_p1  ;;  %s41_s29 = ssub.s32 %s1118_s22, %s1373_s26 }
   0xe   : > { %p153_p6 = scmp.eq.s32.totalorder %s847_s24, 1  ;;  %p44_p7 = scmp.eq.s32.totalorder %s41_s29, 0 }
   0xf   : > { %p1202_p8 = por %p60_p5, %p59_p3  ;;  %p159_p10 = scmp.eq.s32.totalorder %s848_s25, 1 }
  0x10   : > { %p1206_p9 = por %p153_p6, %p53_p1  ;;  %p850_p12 = scmp.ge.s32.totalorder %s1122_s23, 2 }
  0x11   : > { %s1211_s7 = scalar_select %p44_p7, %s1110_s20, %s46_s27  }
  0x12   : > { %p1213_p11 = por %p159_p10, %p59_p3  ;;  %p923_p13 = scmp.lt.s32.totalorder %s1122_s23, 2 }
  0x13   : > { %s213_s9 = sand.u32 1, %s1110_s20   ;;  %s900_s11 = sshll.u32 %s1118_s22, 3 }
  0x14   : > { %s851_s10 = sshll.u32 %s213_s9, 3  ;;  %s224_s14 = scalar_lea.hbm %s1357_s0, %s900_s11 }
  0x15   : > { %s217_s15 = scalar_lea.vmem [#allocation2], %s851_s10  ;;  %s226_s17 = sshll.u32 %s224_s14, 4  ;;  %s227_s17 = int_to_ptr.hbm [resolvable:$true] %s226_s17 }
  0x16   : > { %s228_s16 = sshll.u32 %s217_s15, 4  ;;  %p913_p0 = pnand %p923_p13, %p1196_p4  ;;  %s229_s16 = int_to_ptr.vmem [resolvable:$true] %s228_s16 }
  0x17   : > { %p854_p1 = scmp.ge.s32.totalorder %s1122_s23, 1  ;;  %p240_p2 = scmp.lt.s32.totalorder %s1122_s23, 3 }
  0x18   : > { %s214_s24 = scalar_lea.sflag [#allocation3], %s213_s9 }
  0x19   : > { %915 = dma.hbm_to_vmem [thread:$0]  (!%p913_p0), %s227_s17, 128, %s229_s16, %s214_s24  }
  0x1a   : > { %p241_p3 = pnand %p854_p1, %p240_p2 }
  0x1b   : > { %s1229_s25 = sand.u32 (!%p241_p3), 1, %s1106_s19  }
  0x1c   : > { %244 = sbr.rel (%p241_p3) target bundleno = 809 (0x329), region = 36  ;;  %s1232_s27 = sshll.u32 (!%p241_p3), %s1229_s25, 3 }
  0x1d   : > { %s247_s29 = scalar_lea.sflag (!%p241_p3), [#allocation3], %s1229_s25  ;;  %s250_s10 = scalar_lea.vmem (!%p241_p3), [#allocation2], %s1232_s27 }
  0x21   : > { %1089 = dma.done.wait (%p1202_p8), %s247_s29, 128  }
  0x22   : > { %1091 = vsyncadd (%p1202_p8), %s247_s29, 4294967168  ;;  %v295_v0 = vld [vmem:[%s250_s10] sm:$0xff]  ;;  %v294_v2 = vld [vmem:[%s1358_s1] sm:$0xf]  ;;  %vm366_vm0 = vcmask 31744   ;;  %p288_p4 = scmp.lt.s32.totalorder %s1114_s21, 1 }
  0x23   : > { %297 = vst [vmem:[#allocation1] ss:$2 sm:$0xff] %v295_v0  ;;  %904 = vmatpush.xpose.msk.msra.mxu2 %vm366_vm0, %v294_v2  ;;  %905 = vmatpush.xpose.msk.msra.mxu3 %vm366_vm0, %v294_v2  ;;  %v1124_v0 = vmov 0   ;;  %s901_s17 = sshll.u32 %s1114_s21, 3  ;;  %vm656_vm1 = vcmask 1043456   ;;  %s675_s16 = scalar_lea.sflag [#allocation4], %s1229_s25 }
  0x24   : > { %859 = vmatpush.xpose.msk.msra.mxu0 %vm366_vm0, %v294_v2  ;;  %903 = vmatpush.xpose.msk.msra.mxu1 %vm366_vm0, %v294_v2  ;;  %s289_s30 = scalar_select %p288_p4, %s1114_s21, 1 }
  0x25   : > { %s693_s10 = scalar_lea.hbm %s1361_s4, %s901_s17  ;;  %s286_s21 = scalar_lea.vmem [#allocation6], %s1232_s27 }
  0x26   : > { %s858_s11 = sshll.u32 %s289_s30, 2  ;;  %s710_s30 = scalar_lea.hbm %s1362_s5, %s901_s17 }
  0x27   : > { %s291_s14 = scalar_lea.vmem %s1360_s3, %s858_s11  ;;  %s279_s11 = scalar_lea.vmem [#allocation5], %s1232_s27 }
  0x28   : > { %s1295_s12 = sshll.u32 %s279_s11, 4  ;;  %s697_s13 = sshll.u32 %s693_s10, 4  ;;  %s696_s12 = int_to_ptr.vmem [resolvable:$true] %s1295_s12  ;;  %s698_s13 = int_to_ptr.hbm [resolvable:$true] %s697_s13 }
  0x29   : > { %s714_s15 = sshll.u32 %s710_s30, 4  ;;  %s1022_s17 = sshra.s32 %s698_s13, 4  ;;  %s1304_s15 = int_to_ptr.hbm [resolvable:$true] %s714_s15  ;;  %s1023_s17 = int_to_ptr.hbm [resolvable:$true] %s1022_s17 }
  0x2a   : > { %v299_v1 = vld.sshfl [vmem:[#allocation1 + $0x8] sm:$0xff pattern:$0x75316420]  ;;  %v298_v3 = vld.sshfl [vmem:[#allocation1] sm:$0xff pattern:$0x75316420]  ;;  %p1029_p8 = scmp.lt.s32.totalorder %s1023_s17, %s1361_s4 }
  0x2b   : > { %334 = vxpose.xlu0.b32.start.end [1/1] (short) %v299_v1, 128  ;;  %s1024_s24 = scalar_lea.hbm %s1023_s17, 8  ;;  %s1028_s28 = scalar_lea.hbm %s1361_s4, 16 }
  0x2c   : > { %p1025_p5 = scmp.ne.s32.totalorder %s1023_s17, %s1024_s24  ;;  %p1030_p10 = scmp.lt.s32.totalorder %s1028_s28, %s1024_s24 }
  0x2e   : > { %p1026_p6 = pnand %p1025_p5, %p1206_p9  ;;  %p1031_p13 = por %p1030_p10, %p1029_p8 }
  0x30   : > { %p1027_p7 = pneg %p1026_p6 }
  0x32   : > { %p1032_p0 = pnand %p1031_p13, %p1027_p7 }
  0xab   : > { %302 = vxpose.xlu0.b32.start.end [1/1] (short) %v298_v3, 128 }
  0xcf   : > { %v350_v4 = vpop.trf.xlu0 }
  0xd0   : > { %876 = vmatmul.msk.f32.vlgmr.msra.gmra.mxu2 %vm366_vm0, %v350_v4 }
  0xd7   : > { %v351_v5 = vpop.trf.xlu0 }
  0xd8   : > { %877 = vmatmul.msk.f32.gmra.mxu2 %vm366_vm0, %v351_v5  ;;  %v660_v5 = vld [vmem:[%s291_s14] sm:$0xf]  ;;  %s1300_s14 = sshll.u32 %s286_s21, 4  ;;  %s713_s14 = int_to_ptr.vmem [resolvable:$true] %s1300_s14 }
  0xdf   : > { %v352_v6 = vpop.trf.xlu0 }
  0xe0   : > { %878 = vmatmul.msk.f32.gmra.mxu2 %vm366_vm0, %v352_v6  ;;  %v643_v6 = vld [vmem:[%s1359_s2] sm:$0xf] }
  0xe7   : > { %v353_v7 = vpop.trf.xlu0 }
  0xe8   : > { %879 = vmatmul.msk.f32.gmra.mxu2 %vm366_vm0, %v353_v7 }
  0xef   : > { %v354_v8 = vpop.trf.xlu0 }
  0xf0   : > { %880 = vmatmul.msk.f32.gmra.mxu2 %vm366_vm0, %v354_v8 }
  0xf7   : > { %v355_v9 = vpop.trf.xlu0 }
  0xf8   : > { %881 = vmatmul.msk.f32.gmra.mxu2 %vm366_vm0, %v355_v9 }
  0xff   : > { %v356_v10 = vpop.trf.xlu0 }
 0x100   : > { %882 = vmatmul.msk.f32.gmra.mxu2 %vm366_vm0, %v356_v10 }
 0x107   : > { %v357_v11 = vpop.trf.xlu0 }
 0x108   : > { %883 = vmatmul.msk.f32.gmra.mxu2 %vm366_vm0, %v357_v11 }
 0x10f   : > { %v358_v12 = vpop.trf.xlu0 }
 0x110   : > { %884 = vmatmul.msk.f32.vlgmr.msra.gmra.mxu3 %vm366_vm0, %v358_v12 }
 0x112   : > { %977 = vset.pattern.permute.xlu0 %v1124_v0 }
 0x117   : > { %v359_v13 = vpop.trf.xlu0 }
 0x118   : > { %885 = vmatmul.msk.f32.gmra.mxu3 %vm366_vm0, %v359_v13 }
 0x11f   : > { %v360_v14 = vpop.trf.xlu0 }
 0x120   : > { %886 = vmatmul.msk.f32.gmra.mxu3 %vm366_vm0, %v360_v14 }
 0x127   : > { %v361_v15 = vpop.trf.xlu0 }
 0x128   : > { %887 = vmatmul.msk.f32.gmra.mxu3 %vm366_vm0, %v361_v15 }
 0x12f   : > { %v362_v16 = vpop.trf.xlu0 }
 0x130   : > { %888 = vmatmul.msk.f32.gmra.mxu3 %vm366_vm0, %v362_v16 }
 0x137   : > { %v363_v17 = vpop.trf.xlu0 }
 0x138   : > { %889 = vmatmul.msk.f32.gmra.mxu3 %vm366_vm0, %v363_v17 }
 0x13f   : > { %v364_v18 = vpop.trf.xlu0 }
 0x140   : > { %890 = vmatmul.msk.f32.gmra.mxu3 %vm366_vm0, %v364_v18 }
 0x147   : > { %v365_v19 = vpop.trf.xlu0 }
 0x148   : > { %891 = vmatmul.msk.f32.gmra.mxu3 %vm366_vm0, %v365_v19 }
 0x14f   : > { %v318_v20 = vpop.trf.xlu0 }
 0x150   : > { %860 = vmatmul.msk.f32.vlgmr.msra.gmra.mxu0 %vm366_vm0, %v318_v20 }
 0x153   : > { %v531_v21 = vpop.f32.mrf.mxu2 }
 0x154   : > { %611 = vxpose.xlu2.b32.start [1/16] (narrow) %v531_v21, 8 }
 0x157   : > { %v319_v22 = vpop.trf.xlu0 }
 0x158   : > { %861 = vmatmul.msk.f32.gmra.mxu0 %vm366_vm0, %v319_v22 }
 0x15b   : > { %v534_v23 = vpop.f32.mrf.mxu2 }
 0x15c   : > { %612 = vxpose.xlu2.b32.cont [2/16] (narrow) %v534_v23, 8 }
 0x15f   : > { %v320_v24 = vpop.trf.xlu0 }
 0x160   : > { %862 = vmatmul.msk.f32.gmra.mxu0 %vm366_vm0, %v320_v24 }
 0x163   : > { %v537_v25 = vpop.f32.mrf.mxu2 }
 0x164   : > { %613 = vxpose.xlu2.b32.cont [3/16] (narrow) %v537_v25, 8 }
 0x167   : > { %v321_v26 = vpop.trf.xlu0 }
 0x168   : > { %863 = vmatmul.msk.f32.gmra.mxu0 %vm366_vm0, %v321_v26 }
 0x16b   : > { %v540_v27 = vpop.f32.mrf.mxu2 }
 0x16c   : > { %614 = vxpose.xlu2.b32.cont [4/16] (narrow) %v540_v27, 8 }
 0x16f   : > { %v322_v28 = vpop.trf.xlu0 }
 0x170   : > { %864 = vmatmul.msk.f32.gmra.mxu0 %vm366_vm0, %v322_v28 }
 0x173   : > { %v543_v29 = vpop.f32.mrf.mxu2 }
 0x174   : > { %615 = vxpose.xlu2.b32.cont [5/16] (narrow) %v543_v29, 8 }
 0x177   : > { %v323_v30 = vpop.trf.xlu0 }
 0x178   : > { %865 = vmatmul.msk.f32.gmra.mxu0 %vm366_vm0, %v323_v30 }
 0x17b   : > { %v546_v31 = vpop.f32.mrf.mxu2 }
 0x17c   : > { %616 = vxpose.xlu2.b32.cont [6/16] (narrow) %v546_v31, 8 }
 0x17f   : > { %v324_v32 = vpop.trf.xlu0 }
 0x180   : > { %866 = vmatmul.msk.f32.gmra.mxu0 %vm366_vm0, %v324_v32 }
 0x183   : > { %v549_v33 = vpop.f32.mrf.mxu2 }
 0x184   : > { %617 = vxpose.xlu2.b32.cont [7/16] (narrow) %v549_v33, 8 }
 0x187   : > { %v325_v34 = vpop.trf.xlu0 }
 0x188   : > { %867 = vmatmul.msk.f32.gmra.mxu0 %vm366_vm0, %v325_v34 }
 0x18b   : > { %v552_v35 = vpop.f32.mrf.mxu2 }
 0x18c   : > { %618 = vxpose.xlu2.b32.cont [8/16] (narrow) %v552_v35, 8 }
 0x18f   : > { %v326_v36 = vpop.trf.xlu0 }
 0x190   : > { %868 = vmatmul.msk.f32.vlgmr.msra.gmra.mxu1 %vm366_vm0, %v326_v36 }
 0x193   : > { %v555_v37 = vpop.f32.mrf.mxu3 }
 0x194   : > { %619 = vxpose.xlu2.b32.cont [9/16] (narrow) %v555_v37, 8 }
 0x197   : > { %v327_v38 = vpop.trf.xlu0 }
 0x198   : > { %869 = vmatmul.msk.f32.gmra.mxu1 %vm366_vm0, %v327_v38 }
 0x19b   : > { %v558_v39 = vpop.f32.mrf.mxu3 }
 0x19c   : > { %620 = vxpose.xlu2.b32.cont [10/16] (narrow) %v558_v39, 8 }
 0x19f   : > { %v328_v40 = vpop.trf.xlu0 }
 0x1a0   : > { %870 = vmatmul.msk.f32.gmra.mxu1 %vm366_vm0, %v328_v40 }
 0x1a3   : > { %v561_v41 = vpop.f32.mrf.mxu3 }
 0x1a4   : > { %621 = vxpose.xlu2.b32.cont [11/16] (narrow) %v561_v41, 8 }
 0x1a7   : > { %v329_v42 = vpop.trf.xlu0 }
 0x1a8   : > { %871 = vmatmul.msk.f32.gmra.mxu1 %vm366_vm0, %v329_v42 }
 0x1ab   : > { %v564_v43 = vpop.f32.mrf.mxu3 }
 0x1ac   : > { %622 = vxpose.xlu2.b32.cont [12/16] (narrow) %v564_v43, 8 }
 0x1af   : > { %v330_v44 = vpop.trf.xlu0 }
 0x1b0   : > { %872 = vmatmul.msk.f32.gmra.mxu1 %vm366_vm0, %v330_v44 }
 0x1b3   : > { %v567_v45 = vpop.f32.mrf.mxu3 }
 0x1b4   : > { %623 = vxpose.xlu2.b32.cont [13/16] (narrow) %v567_v45, 8 }
 0x1b7   : > { %v331_v46 = vpop.trf.xlu0 }
 0x1b8   : > { %873 = vmatmul.msk.f32.gmra.mxu1 %vm366_vm0, %v331_v46 }
 0x1bb   : > { %v570_v47 = vpop.f32.mrf.mxu3 }
 0x1bc   : > { %624 = vxpose.xlu2.b32.cont [14/16] (narrow) %v570_v47, 8 }
 0x1bf   : > { %v332_v48 = vpop.trf.xlu0 }
 0x1c0   : > { %874 = vmatmul.msk.f32.gmra.mxu1 %vm366_vm0, %v332_v48 }
 0x1c3   : > { %v573_v49 = vpop.f32.mrf.mxu3 }
 0x1c4   : > { %625 = vxpose.xlu2.b32.cont [15/16] (narrow) %v573_v49, 8 }
 0x1c7   : > { %v333_v50 = vpop.trf.xlu0 }
 0x1c8   : > { %875 = vmatmul.msk.f32.gmra.mxu1 %vm366_vm0, %v333_v50 }
 0x1cb   : > { %v576_v51 = vpop.f32.mrf.mxu3 }
 0x1cc   : > { %626 = vxpose.xlu2.b32.end [16/16] (narrow) %v576_v51, 8 }
 0x1cd   : > { %v483_v52 = vpop.f32.mrf.mxu0 }
 0x1ce   : > { %579 = vxpose.xlu1.b32.start [1/16] (narrow) %v483_v52, 8 }
 0x1d5   : > { %v486_v53 = vpop.f32.mrf.mxu0 }
 0x1d6   : > { %580 = vxpose.xlu1.b32.cont [2/16] (narrow) %v486_v53, 8 }
 0x1dd   : > { %v489_v54 = vpop.f32.mrf.mxu0 }
 0x1de   : > { %581 = vxpose.xlu1.b32.cont [3/16] (narrow) %v489_v54, 8 }
 0x1e5   : > { %v492_v55 = vpop.f32.mrf.mxu0 }
 0x1e6   : > { %582 = vxpose.xlu1.b32.cont [4/16] (narrow) %v492_v55, 8 }
 0x1ed   : > { %v495_v56 = vpop.f32.mrf.mxu0  ;;  %v627_v8 = vpop.trf.xlu2 }
 0x1ee   : > { %583 = vxpose.xlu1.b32.cont [5/16] (narrow) %v495_v56, 8 }
 0x1f5   : > { %v498_v57 = vpop.f32.mrf.mxu0 }
 0x1f6   : > { %584 = vxpose.xlu1.b32.cont [6/16] (narrow) %v498_v57, 8 }
 0x1fd   : > { %v501_v58 = vpop.f32.mrf.mxu0 }
 0x1fe   : > { %585 = vxpose.xlu1.b32.cont [7/16] (narrow) %v501_v58, 8 }
 0x205   : > { %v504_v59 = vpop.f32.mrf.mxu0 }
 0x206   : > { %586 = vxpose.xlu1.b32.cont [8/16] (narrow) %v504_v59, 8 }
 0x20d   : > { %v507_v60 = vpop.f32.mrf.mxu1 }
 0x20e   : > { %587 = vxpose.xlu1.b32.cont [9/16] (narrow) %v507_v60, 8 }
 0x215   : > { %v510_v61 = vpop.f32.mrf.mxu1 }
 0x216   : > { %588 = vxpose.xlu1.b32.cont [10/16] (narrow) %v510_v61, 8 }
 0x21d   : > { %v513_v62 = vpop.f32.mrf.mxu1 }
 0x21e   : > { %589 = vxpose.xlu1.b32.cont [11/16] (narrow) %v513_v62, 8 }
 0x225   : > { %v516_v63 = vpop.f32.mrf.mxu1 }
 0x226   : > { %590 = vxpose.xlu1.b32.cont [12/16] (narrow) %v516_v63, 8 }
 0x22d   : > { %v519_v1 = vpop.f32.mrf.mxu1 }
 0x22e   : > { %591 = vxpose.xlu1.b32.cont [13/16] (narrow) %v519_v1, 8  ;;  %976 = vset.pattern.permute.xlu2 %v1124_v0 }
 0x235   : > { %v522_v2 = vpop.f32.mrf.mxu1  ;;  %663 = vperm.xlu2 %976, %v660_v5  }
 0x236   : > { %592 = vxpose.xlu1.b32.cont [14/16] (narrow) %v522_v2, 8 }
 0x23d   : > { %v525_v3 = vpop.f32.mrf.mxu1 }
 0x23e   : > { %593 = vxpose.xlu1.b32.cont [15/16] (narrow) %v525_v3, 8 }
 0x245   : > { %v528_v4 = vpop.f32.mrf.mxu1 }
 0x246   : > { %594 = vxpose.xlu1.b32.end [16/16] (narrow) %v528_v4, 8 }
 0x272   : > { %v595_v7 = vpop.trf.xlu1 }
 0x28f   : > { %v664_v10 = vpop.permute.xlu2 %663 }
 0x299   : > { %975 = vset.pattern.permute.xlu1 %v1124_v0 }
 0x2a0   : > { %646 = vperm.xlu1 %975, %v643_v6  }
 0x312   : > { %v647_v9 = vpop.permute.xlu1 %646 }
 0x313   : > { %v649_v11 = vadd.f32 %v647_v9, %v595_v7  ;;  %v650_v12 = vadd.f32 %v647_v9, %v627_v8 }
 0x315   : > { %v652_v13 = vmax.f32 %v650_v12, 0.0  ;;  %v667_v14 = vmul.f32 %v664_v10, %v650_v12  ;;  %v651_v15 = vmax.f32 %v649_v11, 0.0  ;;  %v666_v17 = vmul.f32 %v664_v10, %v649_v11 }
 0x317   : > { %v655_v16 = vrot.slane %v652_v13, 4  ;;  %v670_v18 = vrot.slane %v667_v14, 4 }
 0x319   : > { %v657_v19 = vsel %vm656_vm1, %v651_v15, %v655_v16  ;;  %v671_v20 = vsel %vm656_vm1, %v666_v17, %v670_v18 }
 0x31a   : > { %659 = vst [vmem:[%s279_s11] sm:$0xff] %v657_v19 }
 0x31b   : > { %1035 = shalt.err (!%p1032_p0)
}
 0x31c   : > { %908 = dma.vmem_to_hbm [thread:$0]  (%p1206_p9), %s696_s12, 128, %s698_s13, %s675_s16   ;;  %673 = vst [vmem:[%s286_s21] sm:$0xff] %v671_v20 }
 0x31d   : > { %s680_s11 = scalar_lea.sflag [#allocation7], %s1229_s25  ;;  %s1050_s29 = sshra.s32 %s1304_s15, 4  ;;  %s1051_s29 = int_to_ptr.hbm [resolvable:$true] %s1050_s29 }
 0x31e   : > { %s1052_s10 = scalar_lea.hbm %s1051_s29, 8  ;;  %s1056_s28 = scalar_lea.hbm %s1362_s5, 16 }
 0x31f   : > { %p1053_p1 = scmp.ne.s32.totalorder %s1051_s29, %s1052_s10  ;;  %p1057_p4 = scmp.lt.s32.totalorder %s1051_s29, %s1362_s5 }
 0x320   : > { %p1058_p5 = scmp.lt.s32.totalorder %s1056_s28, %s1052_s10 }
 0x321   : > { %p1054_p2 = pnand %p1053_p1, %p1206_p9 }
 0x322   : > { %p1059_p6 = por %p1058_p5, %p1057_p4 }
 0x323   : > { %p1055_p3 = pneg %p1054_p2 }
 0x325   : > { %p1060_p7 = pnand %p1059_p6, %p1055_p3 }
 0x327   : > { %1063 = shalt.err (!%p1060_p7)
}
 0x328   : > { %909 = dma.vmem_to_hbm [thread:$0]  (%p1206_p9), %s713_s14, 128, %s1304_s15, %s680_s11  }
 0x329 PF: > { %s726_s25 = sand.u32 1, %s1102_s18   ;;  %p917_p8 = pnand %p850_p12, %p1213_p11 }
 0x32a   : > { %s727_s27 = scalar_lea.sflag [#allocation4], %s726_s25 }
 0x32b   : > { %p918_p10 = pneg %p917_p8 }
 0x32d   : > { %1093 = dma.done.wait (%p918_p10), %s727_s27, 128  }
 0x32e   : > { %1095 = vsyncadd (%p918_p10), %s727_s27, 4294967168  ;;  %s737_s12 = scalar_lea.sflag [#allocation7], %s726_s25 }
 0x32f   : > { %1097 = dma.done.wait (%p918_p10), %s737_s12, 128  }
 0x330   : > { %1099 = vsyncadd (%p918_p10), %s737_s12, 4294967168  ;;  %s25_s23 = sadd.s32 1, %s1122_s23   ;;  %s1367_s18 = smov %s1106_s19 }
 0x331   : > { %p22_p13 = scmp.ge.s32.totalorder %s25_s23, 4   ;;  %s1368_s19 = smov %s1110_s20 }
 0x332   : > { %s1369_s20 = smov %s1211_s7  ;;  %s1370_s21 = smov %s1118_s22 }
 0x333   : > { %s1371_s22 = smov %s1373_s26  ;;  %24 = sbr.rel (!%p22_p13) target bundleno = 8 (0x8), region = 101 }
 0x338   :  { %743 = vsyncpa [#allocation3], 1 }
 0x339   :  { %745 = vsyncpa [#allocation3 + $0x1], 1 }
 0x33a   :  { %746 = vsyncpa [#allocation4], 1 }
 0x33b   :  { %748 = vsyncpa [#allocation4 + $0x1], 1 }
 0x33c   :  { %749 = vsyncpa [#allocation7], 1 }
 0x33d   :  { %751 = vsyncpa [#allocation7 + $0x1], 1 }

</bundles_post_ra>
